<compile_context>
chip_gen: v7x
topology: tpu7x:2x2x1
jax: 0.10.0
libtpu: 0.0.40
codegen_flags: <defaults>
</compile_context>

<pallas_src>
import jax
import jax.numpy as jnp
from jax.experimental import pallas as pl
from jax.experimental.pallas import tpu as pltpu

_SLOPE = 0.01  # torch default LeakyReLU negative_slope


def _leaky(x, slope=_SLOPE):
    # max(x, slope*x) == leaky_relu(x) for 0 < slope < 1
    return jnp.maximum(x, slope * x)


def _shift_rows_down(y):
    """out[r] = y[r-1]; out[0] = 0.  (1-row sublane shift on a value.)"""
    return jnp.concatenate([jnp.zeros_like(y[:1]), y[:-1]], axis=0)


def _shift_rows_up(y):
    """out[r] = y[r+1]; out[-1] = 0."""
    return jnp.concatenate([y[1:], jnp.zeros_like(y[:1])], axis=0)


def _make_kernel(H, W, Cout, Bblk, has_convx, pack_down):
    M = Bblk * H
    WCout = W * Cout
    n_slab1 = 4 if has_convx else 3
    f32, bf16 = jnp.float32, jnp.bfloat16

    def kernel(*refs):
        if has_convx:
            (x_ref, t1_ref, b1_ref, t2_ref, b2_ref, bx_ref,
             csel_ref, psel_ref, res_ref, down_ref) = refs
        else:
            (x_ref, t1_ref, b1_ref, t2_ref, b2_ref,
             csel_ref, psel_ref, res_ref, down_ref) = refs

        x = x_ref[0]                                     # (M, W*Cin) bf16

        # Per-image vertical boundary masks (rows whose kh=0 / kh=2 tap would
        # read the zero padding of *its own* image, including block edges).
        row_in_img = jax.lax.broadcasted_iota(jnp.int32, (M, WCout), 0) % H
        not_top = row_in_img != 0
        not_bot = row_in_img != (H - 1)

        def conv3x3(lhs_bf16, t_ref, bias, n_slab):
            # One fused MXU matmul: columns = [tap0 | tap1 | tap2 | (shortcut)]
            y = jnp.dot(lhs_bf16, t_ref[...], preferred_element_type=f32)
            y0 = y[:, 0:WCout]
            y1 = y[:, WCout:2 * WCout]
            y2 = y[:, 2 * WCout:3 * WCout]
            out = (jnp.where(not_top, _shift_rows_down(y0), 0.0)
                   + y1
                   + jnp.where(not_bot, _shift_rows_up(y2), 0.0)
                   + bias)
            extra = y[:, 3 * WCout:] if n_slab == 4 else None
            return out, extra

        # ---- conv1 (+ fused 1x1 shortcut slab) + LeakyReLU ------------------
        c1, sc = conv3x3(x, t1_ref, b1_ref[...], n_slab1)
        h1 = _leaky(c1)                                  # (M, W*Cout) f32

        # ---- conv2 + LeakyReLU ----------------------------------------------
        c2, _ = conv3x3(h1.astype(bf16), t2_ref, b2_ref[...], 3)
        h2 = _leaky(c2)

        # ---- residual ---------------------------------------------------------
        if has_convx:
            shortcut = sc + bx_ref[...]
        else:
            shortcut = x.astype(f32)                     # W*Cin == W*Cout here
        res = _leaky(h2 + shortcut)                      # (M, W*Cout) f32
        res_ref[0] = res                                 # lane-dense store

        # ---- 2x2 / stride-2 max-pool ------------------------------------------
        # Row-pair max: 1-row sublane shift + maximum (valid at even rows).
        pairmax = jnp.maximum(res, _shift_rows_up(res))
        pm_bf = pairmax.astype(bf16)
        # Width-pair max + lane compaction: two exact 0/1 selection matmuls
        # (bf16 operands, f32 accumulation -> selection of bf16 values is exact).
        pooled = jnp.maximum(
            jnp.dot(pm_bf, csel_ref[0], preferred_element_type=f32),
            jnp.dot(pm_bf, csel_ref[1], preferred_element_type=f32))
        pooled_bf = pooled.astype(bf16)                  # (M, W2C), valid @ even rows
        if pack_down:
            # Pack pooled rows (2j, 2j+1) side by side -> lane-dense down store.
            a = jnp.dot(psel_ref[0], pooled_bf, preferred_element_type=f32)
            b = jnp.dot(psel_ref[1], pooled_bf, preferred_element_type=f32)
            down_ref[0] = jnp.concatenate([a, b], axis=1)   # (M//4, 2*W2C)
        else:
            down_ref[0] = jnp.dot(psel_ref[0], pooled_bf,
                                  preferred_element_type=f32)  # (M//2, W2C)

    return kernel


def encode_res_block_2d(x_nchw, params):
    """Forward pass of EncodeResBlock2D.  Input / outputs are NCHW float32.

    params: w1 (3,3,Cin,Cout), b1 (Cout,), w2 (3,3,Cout,Cout), b2 (Cout,),
            wx (Cin,Cout) or None, bx (Cout,) or None.
    """
    N, Cin, H, W = x_nchw.shape
    Cout = params["b1"].shape[0]
    # TODO(synk): ceil_mode padding of the max-pool for odd H/W is not handled.
    assert H % 2 == 0 and W % 2 == 0, "even spatial dims assumed"
    has_convx = params.get("wx") is not None
    if not has_convx:
        assert Cin == Cout, "identity shortcut requires in_chl == out_chl"

    f32, bf16 = jnp.float32, jnp.bfloat16
    WCin, WCout, W2C = W * Cin, W * Cout, (W // 2) * Cout

    # ---- batch blocking: stack Bblk images along rows (M = Bblk*H) ------------
    Bblk = 1
    for b in range(1, N + 1):
        if N % b == 0 and b * H <= 512:
            Bblk = b
    NB = N // Bblk
    M = Bblk * H
    pack_down = (H % 4 == 0)          # pack 2 pooled rows per stored row

    # activations: NCHW -> lane-dense (NB, Bblk*H, W*Cin), bf16
    x = jnp.transpose(x_nchw, (0, 2, 3, 1)).reshape(NB, M, WCin).astype(bf16)

    # Block-banded per-tap conv weights (kw taps + horizontal SAME padding are
    # encoded in the band); the 3 kh taps (and the 1x1 shortcut for conv1) are
    # concatenated along the output dim -> one matmul per conv.
    shift = jnp.stack([jnp.eye(W, k=1 - kw, dtype=f32) for kw in range(3)])   # (3,W,W)
    t1 = jnp.einsum("kab,hkio->haibo", shift, params["w1"].astype(f32)
                    ).reshape(3, WCin, WCout)
    t1 = jnp.concatenate([t1[0], t1[1], t1[2]], axis=1)                       # (WCin, 3*WCout)
    if has_convx:
        bxw = jnp.kron(jnp.eye(W, dtype=f32), params["wx"].astype(f32))       # (WCin, WCout)
        t1 = jnp.concatenate([t1, bxw], axis=1)                               # (WCin, 4*WCout)
    t1 = t1.astype(bf16)
    t2 = jnp.einsum("kab,hkio->haibo", shift, params["w2"].astype(f32)
                    ).reshape(3, WCout, WCout)
    t2 = jnp.concatenate([t2[0], t2[1], t2[2]], axis=1).astype(bf16)          # (WCout, 3*WCout)

    b1t = jnp.tile(params["b1"].astype(f32), W).reshape(1, WCout)
    b2t = jnp.tile(params["b2"].astype(f32), W).reshape(1, WCout)

    # 0/1 selection matrices for the max-pool (bf16: selection is exact).
    ew = jnp.eye(W, dtype=f32)
    ic = jnp.eye(Cout, dtype=f32)
    csel = jnp.stack([jnp.kron(ew[:, 0::2], ic),
                      jnp.kron(ew[:, 1::2], ic)]).astype(bf16)   # (2, WCout, W2C)
    em = jnp.eye(M, dtype=f32)
    if pack_down:
        psel = jnp.stack([em[0::4, :], em[2::4, :]]).astype(bf16)   # (2, M//4, M)
        down_rows, down_cols = M // 4, 2 * W2C
    else:
        psel = em[0::2, :][None].astype(bf16)                       # (1, M//2, M)
        down_rows, down_cols = M // 2, W2C

    K1 = 4 if has_convx else 3
    inputs = [x, t1, b1t, t2, b2t]
    in_specs = [
        pl.BlockSpec((1, M, WCin), lambda b: (b, 0, 0)),
        pl.BlockSpec((WCin, K1 * WCout), lambda b: (0, 0)),
        pl.BlockSpec((1, WCout), lambda b: (0, 0)),
        pl.BlockSpec((WCout, 3 * WCout), lambda b: (0, 0)),
        pl.BlockSpec((1, WCout), lambda b: (0, 0)),
    ]
    if has_convx:
        bxb = jnp.tile(params["bx"].astype(f32), W).reshape(1, WCout)
        inputs.append(bxb)
        in_specs.append(pl.BlockSpec((1, WCout), lambda b: (0, 0)))
    inputs += [csel, psel]
    in_specs += [pl.BlockSpec(csel.shape, lambda b: (0, 0, 0)),
                 pl.BlockSpec(psel.shape, lambda b: (0, 0, 0))]

    kernel = _make_kernel(H, W, Cout, Bblk, has_convx, pack_down)

    # VMEM budget derived from actual block sizes; only raise above the default.
    blk_bytes = M * WCin * 2 + M * WCout * 4 + down_rows * down_cols * 4
    wgt_bytes = sum(int(a.size) * a.dtype.itemsize for a in inputs[1:])
    interm_bytes = 10 * M * WCout * 4        # fused-matmul slabs + temporaries
    vmem_est = 2 * (blk_bytes + wgt_bytes) + interm_bytes
    cp = dict(dimension_semantics=("parallel",))
    if vmem_est > 30 * 1024 * 1024:
        cp["vmem_limit_bytes"] = int(min(vmem_est * 1.25, 100 * 1024 * 1024))

    res, down = pl.pallas_call(
        kernel,
        out_shape=(jax.ShapeDtypeStruct((NB, M, WCout), f32),
                   jax.ShapeDtypeStruct((NB, down_rows, down_cols), f32)),
        grid_spec=pltpu.PrefetchScalarGridSpec(
            num_scalar_prefetch=0,
            grid=(NB,),
            in_specs=in_specs,
            out_specs=[pl.BlockSpec((1, M, WCout), lambda b: (b, 0, 0)),
                       pl.BlockSpec((1, down_rows, down_cols), lambda b: (b, 0, 0))],
        ),
        compiler_params=pltpu.CompilerParams(**cp),
    )(*inputs)

    # back to PyTorch NCHW convention (layout plumbing only)
    res = jnp.transpose(res.reshape(N, H, W, Cout), (0, 3, 1, 2))
    down = jnp.transpose(down.reshape(N, H // 2, W // 2, Cout), (0, 3, 1, 2))
    return res, down


def _ref_forward(x_nchw, params):
    """Pure-JAX f32 reference of the PyTorch forward (for correctness check)."""
    x = jnp.transpose(x_nchw, (0, 2, 3, 1)).astype(jnp.float32)     # NHWC

    def conv(h, w, b):
        y = jax.lax.conv_general_dilated(
            h, w, window_strides=(1, 1), padding="SAME",
            dimension_numbers=("NHWC", "HWIO", "NHWC"))
        return y + b

    h = _leaky(conv(x, params["w1"], params["b1"]))
    h = _leaky(conv(h, params["w2"], params["b2"]))
    if params.get("wx") is not None:
        shortcut = jnp.einsum("nhwc,co->nhwo", x, params["wx"]) + params["bx"]
    else:
        shortcut = x
    res = _leaky(h + shortcut)
    N, H, W, C = res.shape
    down = jnp.max(res.reshape(N, H // 2, 2, W // 2, 2, C), axis=(2, 4))
    return (jnp.transpose(res, (0, 3, 1, 2)),
            jnp.transpose(down, (0, 3, 1, 2)))


if __name__ == "__main__":
    key = jax.random.PRNGKey(0)

    def make_params(k, cin, cout, with_convx):
        ks = jax.random.split(k, 6)
        p = {
            "w1": 0.1 * jax.random.normal(ks[0], (3, 3, cin, cout), jnp.float32),
            "b1": 0.1 * jax.random.normal(ks[1], (cout,), jnp.float32),
            "w2": 0.1 * jax.random.normal(ks[2], (3, 3, cout, cout), jnp.float32),
            "b2": 0.1 * jax.random.normal(ks[3], (cout,), jnp.float32),
            "wx": None,
            "bx": None,
        }
        if with_convx:
            p["wx"] = 0.1 * jax.random.normal(ks[4], (cin, cout), jnp.float32)
            p["bx"] = 0.1 * jax.random.normal(ks[5], (cout,), jnp.float32)
        return p

    k1, k2, k3, k4 = jax.random.split(key, 4)
    # bf16 matmul path -> loosened tolerance vs the f32 reference
    ATOL = RTOL = 5e-2

    # case 1: in_chl != out_chl  ->  1x1 conv shortcut
    N, Cin, Cout, H, W = 2, 4, 8, 16, 16
    x = jax.random.normal(k1, (N, Cin, H, W), jnp.float32)
    params = make_params(k2, Cin, Cout, True)
    res, down = encode_res_block_2d(x, params)
    jax.block_until_ready((res, down))
    res_ref, down_ref = _ref_forward(x, params)
    assert res.shape == (N, Cout, H, W) and down.shape == (N, Cout, H // 2, W // 2)
    assert jnp.allclose(res, res_ref, atol=ATOL, rtol=RTOL)
    assert jnp.allclose(down, down_ref, atol=ATOL, rtol=RTOL)

    # case 2: in_chl == out_chl  ->  identity shortcut
    Cin2 = Cout2 = 8
    x2 = jax.random.normal(k3, (N, Cin2, H, W), jnp.float32)
    params2 = make_params(k4, Cin2, Cout2, False)
    res2, down2 = encode_res_block_2d(x2, params2)
    jax.block_until_ready((res2, down2))
    res2_ref, down2_ref = _ref_forward(x2, params2)
    assert res2.shape == (N, Cout2, H, W)
    assert jnp.allclose(res2, res2_ref, atol=ATOL, rtol=RTOL)
    assert jnp.allclose(down2, down2_ref, atol=ATOL, rtol=RTOL)

    print("KERNEL_OK")
</pallas_src>

<mosaic_0001>
module attributes {stable_mosaic.version = 11 : i64} {
  func.func @kernel(%arg0: i32, %arg1: memref<1x32x64xbf16, #tpu.memory_space<vmem>>, %arg2: memref<64x512xbf16, #tpu.memory_space<vmem>>, %arg3: memref<1x128xf32, #tpu.memory_space<vmem>>, %arg4: memref<128x384xbf16, #tpu.memory_space<vmem>>, %arg5: memref<1x128xf32, #tpu.memory_space<vmem>>, %arg6: memref<1x128xf32, #tpu.memory_space<vmem>>, %arg7: memref<2x128x64xbf16, #tpu.memory_space<vmem>>, %arg8: memref<2x8x32xbf16, #tpu.memory_space<vmem>>, %arg9: memref<1x32x128xf32, #tpu.memory_space<vmem>>, %arg10: memref<1x8x128xf32, #tpu.memory_space<vmem>>) attributes {dimension_semantics = [#tpu.dimension_semantics<parallel>], iteration_bounds = array<i64: 1>, scalar_prefetch = 0 : i64, scratch_operands = 0 : i64, tpu.core_type = #tpu.core_type<tc>, window_params = [{transform_indices = @transform_0, window_bounds = array<i64: 1, 32, 64>}, {pipeline_mode = #tpu.pipeline_mode<synchronous>, transform_indices = @transform_1, window_bounds = array<i64: 64, 512>}, {pipeline_mode = #tpu.pipeline_mode<synchronous>, transform_indices = @transform_2, window_bounds = array<i64: 1, 128>}, {pipeline_mode = #tpu.pipeline_mode<synchronous>, transform_indices = @transform_3, window_bounds = array<i64: 128, 384>}, {pipeline_mode = #tpu.pipeline_mode<synchronous>, transform_indices = @transform_4, window_bounds = array<i64: 1, 128>}, {pipeline_mode = #tpu.pipeline_mode<synchronous>, transform_indices = @transform_5, window_bounds = array<i64: 1, 128>}, {pipeline_mode = #tpu.pipeline_mode<synchronous>, transform_indices = @transform_6, window_bounds = array<i64: 2, 128, 64>}, {pipeline_mode = #tpu.pipeline_mode<synchronous>, transform_indices = @transform_7, window_bounds = array<i64: 2, 8, 32>}, {transform_indices = @transform_8, window_bounds = array<i64: 1, 32, 128>}, {transform_indices = @transform_9, window_bounds = array<i64: 1, 8, 128>}]} {
    %c0 = arith.constant 0 : index
    %c0_0 = arith.constant 0 : index
    %c0_1 = arith.constant 0 : index
    %0 = vector.load %arg1[%c0, %c0_0, %c0_1] : memref<1x32x64xbf16, #tpu.memory_space<vmem>>, vector<1x32x64xbf16>
    %1 = vector.shape_cast %0 : vector<1x32x64xbf16> to vector<32x64xbf16>
    %2 = tpu.iota {dimensions = array<i32: 0>} : vector<32x128xi32>
    %c16_i32 = arith.constant 16 : i32
    %c0_i32 = arith.constant 0 : i32
    %3 = arith.cmpi eq, %c16_i32, %c0_i32 : i32
    %c1_i32 = arith.constant 1 : i32
    %4 = arith.select %3, %c1_i32, %c16_i32 : i32
    %5 = vector.broadcast %4 : i32 to vector<32x128xi32>
    %6 = arith.remsi %2, %5 : vector<32x128xi32>
    %c0_i32_2 = arith.constant 0 : i32
    %7 = vector.broadcast %c0_i32_2 : i32 to vector<32x128xi32>
    %8 = arith.cmpi ne, %6, %7 : vector<32x128xi32>
    %c0_i32_3 = arith.constant 0 : i32
    %9 = vector.broadcast %c0_i32_3 : i32 to vector<32x128xi32>
    %10 = arith.cmpi slt, %6, %9 : vector<32x128xi32>
    %c0_i32_4 = arith.constant 0 : i32
    %11 = arith.cmpi slt, %4, %c0_i32_4 : i32
    %12 = vector.broadcast %11 : i1 to vector<32x128xi1>
    %13 = vector.broadcast %12 : vector<32x128xi1> to vector<32x128xi1>
    %14 = arith.xori %10, %13 : vector<32x128xi1>
    %15 = arith.andi %14, %8 : vector<32x128xi1>
    %16 = vector.broadcast %4 : i32 to vector<32x128xi32>
    %17 = arith.addi %6, %16 : vector<32x128xi32>
    %18 = arith.select %15, %17, %6 : vector<32x128xi1>, vector<32x128xi32>
    %c0_i32_5 = arith.constant 0 : i32
    %19 = vector.broadcast %c0_i32_5 : i32 to vector<32x128xi32>
    %20 = arith.cmpi ne, %18, %19 : vector<32x128xi32>
    %c15_i32 = arith.constant 15 : i32
    %21 = vector.broadcast %c15_i32 : i32 to vector<32x128xi32>
    %22 = arith.cmpi ne, %18, %21 : vector<32x128xi32>
    %c0_6 = arith.constant 0 : index
    %c0_7 = arith.constant 0 : index
    %23 = vector.load %arg3[%c0_6, %c0_7] : memref<1x128xf32, #tpu.memory_space<vmem>>, vector<1x128xf32>
    %c0_8 = arith.constant 0 : index
    %c0_9 = arith.constant 0 : index
    %24 = vector.load %arg2[%c0_8, %c0_9] : memref<64x512xbf16, #tpu.memory_space<vmem>>, vector<64x512xbf16>
    %cst = arith.constant dense<0.000000e+00> : vector<32x512xf32>
    %25 = tpu.matmul %1, %24, %cst {dimension_numbers = #tpu.dot_dimension_numbers<[1], [0], [0], [1], [0, 0, 1, 1], [], []>} : vector<32x64xbf16>, vector<64x512xbf16>, vector<32x512xf32> -> vector<32x512xf32>
    %26 = vector.extract_strided_slice %25 {offsets = [0, 0], sizes = [32, 128], strides = [1, 1]} : vector<32x512xf32> to vector<32x128xf32>
    %27 = vector.extract_strided_slice %25 {offsets = [0, 128], sizes = [32, 128], strides = [1, 1]} : vector<32x512xf32> to vector<32x128xf32>
    %28 = vector.extract_strided_slice %25 {offsets = [0, 256], sizes = [32, 128], strides = [1, 1]} : vector<32x512xf32> to vector<32x128xf32>
    %cst_10 = arith.constant 0.000000e+00 : f32
    %29 = vector.broadcast %cst_10 : f32 to vector<1x128xf32>
    %30 = vector.extract_strided_slice %26 {offsets = [0, 0], sizes = [31, 128], strides = [1, 1]} : vector<32x128xf32> to vector<31x128xf32>
    %31 = tpu.concatenate %29, %30 in 0 : vector<1x128xf32>, vector<31x128xf32> -> vector<32x128xf32>
    %cst_11 = arith.constant 0.000000e+00 : f32
    %32 = vector.broadcast %cst_11 : f32 to vector<32x128xf32>
    %33 = arith.select %20, %31, %32 : vector<32x128xi1>, vector<32x128xf32>
    %34 = arith.addf %33, %27 : vector<32x128xf32>
    %35 = vector.extract_strided_slice %28 {offsets = [1, 0], sizes = [31, 128], strides = [1, 1]} : vector<32x128xf32> to vector<31x128xf32>
    %cst_12 = arith.constant 0.000000e+00 : f32
    %36 = vector.broadcast %cst_12 : f32 to vector<1x128xf32>
    %37 = tpu.concatenate %35, %36 in 0 : vector<31x128xf32>, vector<1x128xf32> -> vector<32x128xf32>
    %cst_13 = arith.constant 0.000000e+00 : f32
    %38 = vector.broadcast %cst_13 : f32 to vector<32x128xf32>
    %39 = arith.select %22, %37, %38 : vector<32x128xi1>, vector<32x128xf32>
    %40 = arith.addf %34, %39 : vector<32x128xf32>
    %41 = vector.broadcast %23 : vector<1x128xf32> to vector<32x128xf32>
    %42 = arith.addf %40, %41 : vector<32x128xf32>
    %43 = vector.extract_strided_slice %25 {offsets = [0, 384], sizes = [32, 128], strides = [1, 1]} : vector<32x512xf32> to vector<32x128xf32>
    %cst_14 = arith.constant 0.00999999977 : f32
    %44 = vector.broadcast %cst_14 : f32 to vector<32x128xf32>
    %45 = arith.mulf %44, %42 : vector<32x128xf32>
    %46 = arith.maximumf %42, %45 : vector<32x128xf32>
    %47 = arith.truncf %46 : vector<32x128xf32> to vector<32x128xbf16>
    %c0_15 = arith.constant 0 : index
    %c0_16 = arith.constant 0 : index
    %48 = vector.load %arg5[%c0_15, %c0_16] : memref<1x128xf32, #tpu.memory_space<vmem>>, vector<1x128xf32>
    %c0_17 = arith.constant 0 : index
    %c0_18 = arith.constant 0 : index
    %49 = vector.load %arg4[%c0_17, %c0_18] : memref<128x384xbf16, #tpu.memory_space<vmem>>, vector<128x384xbf16>
    %cst_19 = arith.constant dense<0.000000e+00> : vector<32x384xf32>
    %50 = tpu.matmul %47, %49, %cst_19 {dimension_numbers = #tpu.dot_dimension_numbers<[1], [0], [0], [1], [0, 0, 1, 1], [], []>} : vector<32x128xbf16>, vector<128x384xbf16>, vector<32x384xf32> -> vector<32x384xf32>
    %51 = vector.extract_strided_slice %50 {offsets = [0, 0], sizes = [32, 128], strides = [1, 1]} : vector<32x384xf32> to vector<32x128xf32>
    %52 = vector.extract_strided_slice %50 {offsets = [0, 128], sizes = [32, 128], strides = [1, 1]} : vector<32x384xf32> to vector<32x128xf32>
    %53 = vector.extract_strided_slice %50 {offsets = [0, 256], sizes = [32, 128], strides = [1, 1]} : vector<32x384xf32> to vector<32x128xf32>
    %cst_20 = arith.constant 0.000000e+00 : f32
    %54 = vector.broadcast %cst_20 : f32 to vector<1x128xf32>
    %55 = vector.extract_strided_slice %51 {offsets = [0, 0], sizes = [31, 128], strides = [1, 1]} : vector<32x128xf32> to vector<31x128xf32>
    %56 = tpu.concatenate %54, %55 in 0 : vector<1x128xf32>, vector<31x128xf32> -> vector<32x128xf32>
    %cst_21 = arith.constant 0.000000e+00 : f32
    %57 = vector.broadcast %cst_21 : f32 to vector<32x128xf32>
    %58 = arith.select %20, %56, %57 : vector<32x128xi1>, vector<32x128xf32>
    %59 = arith.addf %58, %52 : vector<32x128xf32>
    %60 = vector.extract_strided_slice %53 {offsets = [1, 0], sizes = [31, 128], strides = [1, 1]} : vector<32x128xf32> to vector<31x128xf32>
    %cst_22 = arith.constant 0.000000e+00 : f32
    %61 = vector.broadcast %cst_22 : f32 to vector<1x128xf32>
    %62 = tpu.concatenate %60, %61 in 0 : vector<31x128xf32>, vector<1x128xf32> -> vector<32x128xf32>
    %cst_23 = arith.constant 0.000000e+00 : f32
    %63 = vector.broadcast %cst_23 : f32 to vector<32x128xf32>
    %64 = arith.select %22, %62, %63 : vector<32x128xi1>, vector<32x128xf32>
    %65 = arith.addf %59, %64 : vector<32x128xf32>
    %66 = vector.broadcast %48 : vector<1x128xf32> to vector<32x128xf32>
    %67 = arith.addf %65, %66 : vector<32x128xf32>
    %cst_24 = arith.constant 0.00999999977 : f32
    %68 = vector.broadcast %cst_24 : f32 to vector<32x128xf32>
    %69 = arith.mulf %68, %67 : vector<32x128xf32>
    %70 = arith.maximumf %67, %69 : vector<32x128xf32>
    %c0_25 = arith.constant 0 : index
    %c0_26 = arith.constant 0 : index
    %71 = vector.load %arg6[%c0_25, %c0_26] : memref<1x128xf32, #tpu.memory_space<vmem>>, vector<1x128xf32>
    %72 = vector.broadcast %71 : vector<1x128xf32> to vector<32x128xf32>
    %73 = arith.addf %43, %72 : vector<32x128xf32>
    %74 = arith.addf %70, %73 : vector<32x128xf32>
    %cst_27 = arith.constant 0.00999999977 : f32
    %75 = vector.broadcast %cst_27 : f32 to vector<32x128xf32>
    %76 = arith.mulf %75, %74 : vector<32x128xf32>
    %77 = arith.maximumf %74, %76 : vector<32x128xf32>
    %c0_28 = arith.constant 0 : index
    %c0_29 = arith.constant 0 : index
    %c0_30 = arith.constant 0 : index
    %78 = vector.load %arg9[%c0_28, %c0_29, %c0_30] : memref<1x32x128xf32, #tpu.memory_space<vmem>>, vector<1x32x128xf32>
    %79 = vector.shape_cast %78 : vector<1x32x128xf32> to vector<32x128xf32>
    %80 = vector.shape_cast %77 : vector<32x128xf32> to vector<1x32x128xf32>
    tpu.vector_store %arg9[%c0_28, %c0_29, %c0_30], %80 {strides = array<i32>} : memref<1x32x128xf32, #tpu.memory_space<vmem>>, vector<1x32x128xf32>,
    %81 = vector.extract_strided_slice %77 {offsets = [1, 0], sizes = [31, 128], strides = [1, 1]} : vector<32x128xf32> to vector<31x128xf32>
    %cst_31 = arith.constant 0.000000e+00 : f32
    %82 = vector.broadcast %cst_31 : f32 to vector<1x128xf32>
    %83 = tpu.concatenate %81, %82 in 0 : vector<31x128xf32>, vector<1x128xf32> -> vector<32x128xf32>
    %84 = arith.maximumf %77, %83 : vector<32x128xf32>
    %85 = arith.truncf %84 : vector<32x128xf32> to vector<32x128xbf16>
    %c0_32 = arith.constant 0 : index
    %c0_33 = arith.constant 0 : index
    %c0_34 = arith.constant 0 : index
    %86 = vector.load %arg7[%c0_32, %c0_33, %c0_34] : memref<2x128x64xbf16, #tpu.memory_space<vmem>>, vector<1x128x64xbf16>
    %87 = vector.shape_cast %86 : vector<1x128x64xbf16> to vector<128x64xbf16>
    %cst_35 = arith.constant dense<0.000000e+00> : vector<32x64xf32>
    %88 = tpu.matmul %85, %87, %cst_35 {dimension_numbers = #tpu.dot_dimension_numbers<[1], [0], [0], [1], [0, 0, 1, 1], [], []>} : vector<32x128xbf16>, vector<128x64xbf16>, vector<32x64xf32> -> vector<32x64xf32>
    %c1 = arith.constant 1 : index
    %c0_36 = arith.constant 0 : index
    %c0_37 = arith.constant 0 : index
    %89 = vector.load %arg7[%c1, %c0_36, %c0_37] : memref<2x128x64xbf16, #tpu.memory_space<vmem>>, vector<1x128x64xbf16>
    %90 = vector.shape_cast %89 : vector<1x128x64xbf16> to vector<128x64xbf16>
    %cst_38 = arith.constant dense<0.000000e+00> : vector<32x64xf32>
    %91 = tpu.matmul %85, %90, %cst_38 {dimension_numbers = #tpu.dot_dimension_numbers<[1], [0], [0], [1], [0, 0, 1, 1], [], []>} : vector<32x128xbf16>, vector<128x64xbf16>, vector<32x64xf32> -> vector<32x64xf32>
    %92 = arith.maximumf %88, %91 : vector<32x64xf32>
    %93 = arith.truncf %92 : vector<32x64xf32> to vector<32x64xbf16>
    %c0_39 = arith.constant 0 : index
    %c0_40 = arith.constant 0 : index
    %c0_41 = arith.constant 0 : index
    %94 = vector.load %arg8[%c0_39, %c0_40, %c0_41] : memref<2x8x32xbf16, #tpu.memory_space<vmem>>, vector<1x8x32xbf16>
    %95 = vector.shape_cast %94 : vector<1x8x32xbf16> to vector<8x32xbf16>
    %cst_42 = arith.constant dense<0.000000e+00> : vector<8x64xf32>
    %96 = tpu.matmul %95, %93, %cst_42 {dimension_numbers = #tpu.dot_dimension_numbers<[1], [0], [0], [1], [0, 0, 1, 1], [], []>} : vector<8x32xbf16>, vector<32x64xbf16>, vector<8x64xf32> -> vector<8x64xf32>
    %c1_43 = arith.constant 1 : index
    %c0_44 = arith.constant 0 : index
    %c0_45 = arith.constant 0 : index
    %97 = vector.load %arg8[%c1_43, %c0_44, %c0_45] : memref<2x8x32xbf16, #tpu.memory_space<vmem>>, vector<1x8x32xbf16>
    %98 = vector.shape_cast %97 : vector<1x8x32xbf16> to vector<8x32xbf16>
    %cst_46 = arith.constant dense<0.000000e+00> : vector<8x64xf32>
    %99 = tpu.matmul %98, %93, %cst_46 {dimension_numbers = #tpu.dot_dimension_numbers<[1], [0], [0], [1], [0, 0, 1, 1], [], []>} : vector<8x32xbf16>, vector<32x64xbf16>, vector<8x64xf32> -> vector<8x64xf32>
    %100 = tpu.concatenate %96, %99 in 1 : vector<8x64xf32>, vector<8x64xf32> -> vector<8x128xf32>
    %c0_47 = arith.constant 0 : index
    %c0_48 = arith.constant 0 : index
    %c0_49 = arith.constant 0 : index
    %101 = vector.load %arg10[%c0_47, %c0_48, %c0_49] : memref<1x8x128xf32, #tpu.memory_space<vmem>>, vector<1x8x128xf32>
    %102 = vector.shape_cast %101 : vector<1x8x128xf32> to vector<8x128xf32>
    %103 = vector.shape_cast %100 : vector<8x128xf32> to vector<1x8x128xf32>
    tpu.vector_store %arg10[%c0_47, %c0_48, %c0_49], %103 {strides = array<i32>} : memref<1x8x128xf32, #tpu.memory_space<vmem>>, vector<1x8x128xf32>,
    return
  }
  func.func @transform_0(%arg0: i32) -> (i32, i32, i32) {
    %c0_i32 = arith.constant 0 : i32
    %c0_i32_0 = arith.constant 0 : i32
    %c0_i32_1 = arith.constant 0 : i32
    return %arg0, %c0_i32, %c0_i32_0 : i32, i32, i32
  }
  func.func @transform_1(%arg0: i32) -> (i32, i32) {
    %c0_i32 = arith.constant 0 : i32
    %c0_i32_0 = arith.constant 0 : i32
    %c0_i32_1 = arith.constant 0 : i32
    return %c0_i32, %c0_i32_0 : i32, i32
  }
  func.func @transform_2(%arg0: i32) -> (i32, i32) {
    %c0_i32 = arith.constant 0 : i32
    %c0_i32_0 = arith.constant 0 : i32
    %c0_i32_1 = arith.constant 0 : i32
    return %c0_i32, %c0_i32_0 : i32, i32
  }
  func.func @transform_3(%arg0: i32) -> (i32, i32) {
    %c0_i32 = arith.constant 0 : i32
    %c0_i32_0 = arith.constant 0 : i32
    %c0_i32_1 = arith.constant 0 : i32
    return %c0_i32, %c0_i32_0 : i32, i32
  }
  func.func @transform_4(%arg0: i32) -> (i32, i32) {
    %c0_i32 = arith.constant 0 : i32
    %c0_i32_0 = arith.constant 0 : i32
    %c0_i32_1 = arith.constant 0 : i32
    return %c0_i32, %c0_i32_0 : i32, i32
  }
  func.func @transform_5(%arg0: i32) -> (i32, i32) {
    %c0_i32 = arith.constant 0 : i32
    %c0_i32_0 = arith.constant 0 : i32
    %c0_i32_1 = arith.constant 0 : i32
    return %c0_i32, %c0_i32_0 : i32, i32
  }
  func.func @transform_6(%arg0: i32) -> (i32, i32, i32) {
    %c0_i32 = arith.constant 0 : i32
    %c0_i32_0 = arith.constant 0 : i32
    %c0_i32_1 = arith.constant 0 : i32
    %c0_i32_2 = arith.constant 0 : i32
    return %c0_i32, %c0_i32_0, %c0_i32_1 : i32, i32, i32
  }
  func.func @transform_7(%arg0: i32) -> (i32, i32, i32) {
    %c0_i32 = arith.constant 0 : i32
    %c0_i32_0 = arith.constant 0 : i32
    %c0_i32_1 = arith.constant 0 : i32
    %c0_i32_2 = arith.constant 0 : i32
    return %c0_i32, %c0_i32_0, %c0_i32_1 : i32, i32, i32
  }
  func.func @transform_8(%arg0: i32) -> (i32, i32, i32) {
    %c0_i32 = arith.constant 0 : i32
    %c0_i32_0 = arith.constant 0 : i32
    %c0_i32_1 = arith.constant 0 : i32
    return %arg0, %c0_i32, %c0_i32_0 : i32, i32, i32
  }
  func.func @transform_9(%arg0: i32) -> (i32, i32, i32) {
    %c0_i32 = arith.constant 0 : i32
    %c0_i32_0 = arith.constant 0 : i32
    %c0_i32_1 = arith.constant 0 : i32
    return %arg0, %c0_i32, %c0_i32_0 : i32, i32, i32
  }
}

</mosaic_0001>

<bundles_post_ra>
// kernel: tpu_custom_call.1
= control target key start
LH: loop header
LB: loop body
LE: loop exit
PB: predicated region body
PF: predicated region fallthrough
CT: control target
= control target key end

     0   :  { %15 = vsyncpa [#allocation3], 0  ;;  %s1859_s0 = inlined_call_operand.hbm [shape: bf16[1,32,64], index: 0, kind: input, shape index: {}]   ;;  %s1860_s1 = inlined_call_operand.hbm [shape: bf16[64,512], index: 1, kind: input, shape index: {}]   ;;  %s1861_s2 = inlined_call_operand.vmem [shape: f32[1,128], index: 2, kind: input, shape index: {}]   ;;  %s1862_s3 = inlined_call_operand.vmem [shape: bf16[128,384], index: 3, kind: input, shape index: {}]   ;;  %s1863_s4 = inlined_call_operand.vmem [shape: f32[1,128], index: 4, kind: input, shape index: {}]   ;;  %s1864_s5 = inlined_call_operand.vmem [shape: f32[1,128], index: 5, kind: input, shape index: {}]   ;;  %s1865_s6 = inlined_call_operand.vmem [shape: bf16[2,128,64], index: 6, kind: input, shape index: {}]   ;;  %s1866_s7 = inlined_call_operand.vmem [shape: bf16[2,8,32], index: 7, kind: input, shape index: {}]   ;;  %s1867_s8 = inlined_call_operand.hbm [shape: f32[1,32,128], index: 8, kind: output, shape index: {0}]   ;;  %s1868_s9 = inlined_call_operand.hbm [shape: f32[1,8,128], index: 9, kind: output, shape index: {1}]  }
   0x1   :  { %16 = vsyncpa [#allocation6], 0 }
   0x2   :  { %17 = vsyncpa [#allocation4], 0 }
   0x3   :  { %18 = vsyncpa [#allocation9], 0  ;;  %s1535_s30 = smov [#allocation2]   ;;  %s1439_s13 = scalar_lea.hbm %s1859_s0, 256 }
   0x4   :  { %s24_s10 = sshll.u32 %s1535_s30, 4  ;;  %p1440_p0 = scmp.ne.s32.totalorder %s1859_s0, %s1439_s13  ;;  %s25_s10 = int_to_ptr.vmem [resolvable:$true] %s24_s10 }
   0x5   :  { %p1443_p1 = scmp.lt.u32.totalorder %s1439_s13, %s1859_s0 }
   0x7   :  { %p1445_p2 = pnand %p1443_p1, %p1440_p0 }
   0x9   :  { %1448 = shalt.err (!%p1445_p2)
}
   0xa   :  { %s1449_s18 = scalar_lea.vmem %s25_s10, 256  ;;  %p1454_p4 = scmp.lt.s32.totalorder %s25_s10, %s25_s10 }
   0xb   :  { %p1450_p3 = scmp.ne.s32.totalorder %s25_s10, %s1449_s18  ;;  %p1455_p5 = scmp.lt.s32.totalorder %s1449_s18, %s1449_s18 }
   0xd   :  { %p1456_p6 = por %p1455_p5, %p1454_p4 }
   0xf   :  { %p1457_p7 = pnand %p1456_p6, %p1450_p3 }
  0x11   :  { %1460 = shalt.err (!%p1457_p7)
}
  0x12   :  { %s1536_s19 = smov 64   ;;  %s1537_s20 = smov 4  }
  0x13   :  { %30 = dma.hbm_to_vmem [thread:$0]  %s1859_s0, 256, %s25_s10, [#allocation3], %s1536_s19, %s1536_s19, %s1537_s20  }
  0x14   :  { %s1538_s23 = smov [#allocation5]   ;;  %s1461_s27 = scalar_lea.hbm %s1860_s1, 2048 }
  0x15   :  { %s36_s24 = sshll.u32 %s1538_s23, 4  ;;  %p1462_p8 = scmp.ne.s32.totalorder %s1860_s1, %s1461_s27  ;;  %s37_s24 = int_to_ptr.vmem [resolvable:$true] %s36_s24 }
  0x16   :  { %p1465_p9 = scmp.lt.u32.totalorder %s1461_s27, %s1860_s1 }
  0x18   :  { %p1467_p10 = pnand %p1465_p9, %p1462_p8 }
  0x1a   :  { %1470 = shalt.err (!%p1467_p10)
}
  0x1b   :  { %s1471_s12 = scalar_lea.vmem %s37_s24, 2048  ;;  %p1476_p12 = scmp.lt.s32.totalorder %s37_s24, %s37_s24 }
  0x1c   :  { %p1472_p11 = scmp.ne.s32.totalorder %s37_s24, %s1471_s12  ;;  %p1477_p13 = scmp.lt.s32.totalorder %s1471_s12, %s1471_s12 }
  0x1e   :  { %p1478_p0 = por %p1477_p13, %p1476_p12 }
  0x20   :  { %p1479_p1 = pnand %p1478_p0, %p1472_p11 }
  0x22   :  { %1482 = shalt.err (!%p1479_p1)
}
  0x23   :  { %s1539_s0 = smov 256   ;;  %s1540_s10 = smov 16  }
  0x24   :  { %42 = dma.hbm_to_vmem [thread:$0]  %s1860_s1, 2048, %s37_s24, [#allocation6], %s1539_s0, %s1539_s0, %s1540_s10  }
  0x25   :  { %1527 = dma.done.wait [#allocation3], 256  }
  0x26   :  { %1528 = vsyncadd [#allocation3], 4294967040 }
  0x27   :  { %1529 = dma.done.wait [#allocation6], 2048  }
  0x28   :  { %1530 = vsyncadd [#allocation6], 4294965248  ;;  %v1541_v0 = vmov 0   ;;  %v1365_v1 = vld [vmem:[#allocation5 + $0x4] ss:$16 sps:$4 sm:$0xff]   ;;  %vm234_vm0 = vcmask 523264   ;;  %v66_v43 = vlaneseq }
  0x29   :  { %273 = vmatprep.mubr.bf16.mxu0 %v1541_v0  ;;  %326 = vmatprep.mubr.bf16.mxu1 %v1541_v0  ;;  %v1367_v2 = vld [vmem:[#allocation5 + $0xc] ss:$16 sps:$4 sm:$0xff]   ;;  %v1369_v3 = vld [vmem:[#allocation5] ss:$16 sps:$4 sm:$0xff]   ;;  %v1370_v4 = vld [vmem:[#allocation5 + $0x8] ss:$16 sps:$4 sm:$0xff]  }
  0x2a   :  { %241 = vmatprep.subr.bf16.mxu0 %v1365_v1  ;;  %294 = vmatprep.subr.bf16.mxu1 %v1367_v2  ;;  %v1371_v5 = vld [vmem:[#allocation5 + $0x24] ss:$16 sps:$4 sm:$0xff]   ;;  %v1373_v6 = vld [vmem:[#allocation5 + $0x2c] ss:$16 sps:$4 sm:$0xff]   ;;  %v1375_v7 = vld [vmem:[#allocation5 + $0x20] ss:$16 sps:$4 sm:$0xff]  }
  0x2b   :  { %242 = vmatpush1.bf16.msra.mxu0 %v1369_v3  ;;  %295 = vmatpush1.bf16.msra.mxu1 %v1370_v4  ;;  %v1376_v8 = vld [vmem:[#allocation5 + $0x28] ss:$16 sps:$4 sm:$0xff]   ;;  %v1377_v9 = vld [vmem:[#allocation5 + $0x44] ss:$16 sps:$4 sm:$0xff]   ;;  %v1379_v10 = vld [vmem:[#allocation5 + $0x4c] ss:$16 sps:$4 sm:$0xff]  }
  0x2c   :  { %243 = vmatprep.subr.bf16.mxu0 %v1371_v5  ;;  %296 = vmatprep.subr.bf16.mxu1 %v1373_v6  ;;  %v1381_v11 = vld [vmem:[#allocation5 + $0x40] ss:$16 sps:$4 sm:$0xff]   ;;  %v1382_v12 = vld [vmem:[#allocation5 + $0x48] ss:$16 sps:$4 sm:$0xff]   ;;  %v1383_v13 = vld [vmem:[#allocation5 + $0x64] ss:$16 sps:$4 sm:$0xff]  }
  0x2d   :  { %v1385_v14 = vld [vmem:[#allocation5 + $0x6c] ss:$16 sps:$4 sm:$0xff]   ;;  %v1387_v15 = vld [vmem:[#allocation5 + $0x60] ss:$16 sps:$4 sm:$0xff]   ;;  %v1388_v16 = vld [vmem:[#allocation5 + $0x68] ss:$16 sps:$4 sm:$0xff]  }
  0x2e   :  { %v1393_v17 = vld [vmem:[%s1862_s3 + $0x4] ss:$12 sps:$4 sm:$0xff]   ;;  %v1394_v18 = vld [vmem:[%s1862_s3 + $0x8] ss:$12 sps:$4 sm:$0xff]   ;;  %v1391_v20 = vld [vmem:[%s1862_s3] ss:$12 sps:$4 sm:$0xff]  }
  0x2f   :  { %244 = vmatpush1.bf16.msra.mxu0 %v1375_v7  ;;  %297 = vmatpush1.bf16.msra.mxu1 %v1376_v8  ;;  %v1389_v19 = vld [vmem:[#allocation2] sm:$0xff]   ;;  %v1397_v21 = vld [vmem:[%s1862_s3 + $0x1c] ss:$12 sps:$4 sm:$0xff]   ;;  %v1405_v28 = vld [vmem:[%s1862_s3 + $0x4c] ss:$12 sps:$4 sm:$0xff]   ;;  %v67_v44 = vshrl.u32 %v66_v43, 7 }
  0x30   :  { %245 = vmatprep.subr.bf16.mxu0 %v1377_v9  ;;  %298 = vmatprep.subr.bf16.mxu1 %v1379_v10  ;;  %v1398_v22 = vld [vmem:[%s1862_s3 + $0x20] ss:$12 sps:$4 sm:$0xff]   ;;  %v1395_v23 = vld [vmem:[%s1862_s3 + $0x18] ss:$12 sps:$4 sm:$0xff]   ;;  %v1399_v26 = vld [vmem:[%s1862_s3 + $0x30] ss:$12 sps:$4 sm:$0xff]  }
  0x31   :  { %v1401_v24 = vld [vmem:[%s1862_s3 + $0x34] ss:$12 sps:$4 sm:$0xff]   ;;  %v1390_v25 = vld [vmem:[#allocation2 + $0x8] sm:$0xff]   ;;  %v1402_v27 = vld [vmem:[%s1862_s3 + $0x38] ss:$12 sps:$4 sm:$0xff]   ;;  %v75_v45 = vand.u32 15, %v67_v44 }
  0x32   :  { %v1403_v29 = vld [vmem:[%s1862_s3 + $0x48] ss:$12 sps:$4 sm:$0xff]   ;;  %v1406_v30 = vld [vmem:[%s1862_s3 + $0x50] ss:$12 sps:$4 sm:$0xff]   ;;  %v1407_v32 = vld [vmem:[%s1862_s3 + $0x60] ss:$12 sps:$4 sm:$0xff]  }
  0x33   :  { %246 = vmatpush1.bf16.msra.mxu0 %v1381_v11  ;;  %299 = vmatpush1.bf16.msra.mxu1 %v1382_v12  ;;  %v1409_v31 = vld [vmem:[%s1862_s3 + $0x64] ss:$12 sps:$4 sm:$0xff]   ;;  %v1410_v33 = vld [vmem:[%s1862_s3 + $0x68] ss:$12 sps:$4 sm:$0xff]   ;;  %v1414_v36 = vld [vmem:[%s1862_s3 + $0x80] ss:$12 sps:$4 sm:$0xff]  }
  0x34   :  { %247 = vmatprep.subr.bf16.mxu0 %v1383_v13  ;;  %300 = vmatprep.subr.bf16.mxu1 %v1385_v14  ;;  %v1413_v34 = vld [vmem:[%s1862_s3 + $0x7c] ss:$12 sps:$4 sm:$0xff]   ;;  %v1411_v35 = vld [vmem:[%s1862_s3 + $0x78] ss:$12 sps:$4 sm:$0xff]   ;;  %v1417_v37 = vld [vmem:[%s1862_s3 + $0x94] ss:$12 sps:$4 sm:$0xff]  }
  0x35   :  { %v1415_v38 = vld [vmem:[%s1862_s3 + $0x90] ss:$12 sps:$4 sm:$0xff]   ;;  %v1418_v39 = vld [vmem:[%s1862_s3 + $0x98] ss:$12 sps:$4 sm:$0xff]   ;;  %v1419_v41 = vld [vmem:[%s1862_s3 + $0xa8] ss:$12 sps:$4 sm:$0xff]  }
  0x36   :  { %v1421_v40 = vld [vmem:[%s1862_s3 + $0xac] ss:$12 sps:$4 sm:$0xff]   ;;  %v1422_v42 = vld [vmem:[%s1862_s3 + $0xb0] ss:$12 sps:$4 sm:$0xff]   ;;  %vm351_vm1 = vcmask 1040384   ;;  %v68_v48 = vadd.s32 8, %v67_v44 }
  0x37   :  { %248 = vmatpush1.bf16.msra.mxu0 %v1387_v15  ;;  %301 = vmatpush1.bf16.msra.mxu1 %v1388_v16  ;;  %vm1705_vm2 = vcmp.ne.s32.totalorder %v75_v45, 0  ;;  %v69_v53 = vadd.s32 16, %v67_v44  ;;  %vm376_vm3 = vcmask 1046528   ;;  %v70_v1 = vadd.s32 24, %v67_v44  ;;  %v1178_v8 = vld [vmem:[%s1861_s2] ss:$0 sm:$0xff] }
  0x38   :  { %578 = vmatprep.subr.bf16.mxu0 %v1393_v17  ;;  %1276 = vmatprep.subr.bf16.mxu1 %v1394_v18  ;;  %v82_v63 = vand.u32 15, %v68_v48  ;;  %vm1543_vm7 = vmmov 0   ;;  %vm1029_vm8 = vcmask 261120   ;;  %s1544_s12 = smov [#allocation7]  }
  0x39   :  { %v89_v5 = vand.u32 15, %v69_v53  ;;  %v96_v11 = vand.u32 15, %v70_v1  ;;  %v1433_v1 = vld [vmem:[%s1865_s6 + $0x28] sm:$0xff]   ;;  %s1129_s0 = sshll.u32 %s1544_s12, 4  ;;  %s1130_s0 = int_to_ptr.vmem [resolvable:$true] %s1129_s0 }
  0x3a   :  { %1174 = vmatmul.mubr.msk.bf16.vlgmr.msra.gmra.mrb[0].mxu0 %vm234_vm0, %v1389_v19  ;;  %1176 = vmatmul.mubr.msk.bf16.vlgmr.msra.gmra.mrb[0].mxu1 %vm234_vm0, %v1389_v19  ;;  %vm1721_vm4 = vcmp.ne.s32.totalorder %v82_v63, 15  ;;  %v1432_v63 = vld [vmem:[%s1865_s6 + $0x60] sm:$0xff]   ;;  %s1483_s10 = scalar_lea.vmem %s1130_s0, 512  ;;  %p1488_p3 = scmp.lt.s32.totalorder %s1130_s0, %s1130_s0 }
  0x3b   :  { %283 = vmatprep.mubr.bf16.mxu0 %v1541_v0  ;;  %336 = vmatprep.mubr.bf16.mxu1 %v1541_v0  ;;  %vm1725_vm5 = vcmp.ne.s32.totalorder %v89_v5, 0  ;;  %vm1739_vm6 = vcmp.ne.s32.totalorder %v96_v11, 15  ;;  %v1437_v5 = vld [vmem:[%s1865_s6 + $0x38] sm:$0xff]   ;;  %p1484_p2 = scmp.ne.s32.totalorder %s1130_s0, %s1483_s10  ;;  %p1489_p4 = scmp.lt.s32.totalorder %s1483_s10, %s1483_s10 }
  0x3c   :  { %579 = vmatpush1.bf16.msra.mxu0 %v1391_v20  ;;  %1277 = vmatpush3.bf16.msra.mxu1 %v1394_v18 }
  0x3d   :  { %580 = vmatprep.subr.bf16.mxu0 %v1397_v21  ;;  %1278 = vmatprep.subr.bf16.mxu1 %v1398_v22  ;;  %p1490_p5 = por %p1489_p4, %p1488_p3 }
  0x3f   :  { %p1491_p6 = pnand %p1490_p5, %p1484_p2 }
  0x40   :  { %581 = vmatpush1.bf16.msra.mxu0 %v1395_v23  ;;  %1279 = vmatpush3.bf16.msra.mxu1 %v1398_v22 }
  0x41   :  { %582 = vmatprep.subr.bf16.mxu0 %v1401_v24  ;;  %1280 = vmatprep.subr.bf16.mxu1 %v1402_v27 }
  0x42   :  { %1175 = vmatmul.mubr.msk.bf16.gmra.mrb[4].mxu0 %vm234_vm0, %v1390_v25  ;;  %1177 = vmatmul.mubr.msk.bf16.gmra.mrb[4].mxu1 %vm234_vm0, %v1390_v25 }
  0x43   :  { %610 = vmatprep.mubr.bf16.mxu0 %v1541_v0 }
  0x44   :  { %583 = vmatpush1.bf16.msra.mxu0 %v1399_v26  ;;  %1281 = vmatpush3.bf16.msra.mxu1 %v1402_v27 }
  0x45   :  { %584 = vmatprep.subr.bf16.mxu0 %v1405_v28  ;;  %1282 = vmatprep.subr.bf16.mxu1 %v1406_v30 }
  0x48   :  { %585 = vmatpush1.bf16.msra.mxu0 %v1403_v29  ;;  %1283 = vmatpush3.bf16.msra.mxu1 %v1406_v30 }
  0x49   :  { %586 = vmatprep.subr.bf16.mxu0 %v1409_v31  ;;  %1284 = vmatprep.subr.bf16.mxu1 %v1410_v33 }
  0x4c   :  { %587 = vmatpush1.bf16.msra.mxu0 %v1407_v32  ;;  %1285 = vmatpush3.bf16.msra.mxu1 %v1410_v33 }
  0x4d   :  { %588 = vmatprep.subr.bf16.mxu0 %v1413_v34  ;;  %1286 = vmatprep.subr.bf16.mxu1 %v1414_v36 }
  0x50   :  { %589 = vmatpush1.bf16.msra.mxu0 %v1411_v35  ;;  %1287 = vmatpush3.bf16.msra.mxu1 %v1414_v36 }
  0x51   :  { %590 = vmatprep.subr.bf16.mxu0 %v1417_v37  ;;  %1288 = vmatprep.subr.bf16.mxu1 %v1418_v39 }
  0x54   :  { %591 = vmatpush1.bf16.msra.mxu0 %v1415_v38  ;;  %1289 = vmatpush3.bf16.msra.mxu1 %v1418_v39 }
  0x55   :  { %592 = vmatprep.subr.bf16.mxu0 %v1421_v40  ;;  %1290 = vmatprep.subr.bf16.mxu1 %v1422_v42 }
  0x58   :  { %593 = vmatpush1.bf16.msra.mxu0 %v1419_v41  ;;  %1291 = vmatpush3.bf16.msra.mxu1 %v1422_v42 }
 0x10d   :  { %v275_v46 = vpop.f32.mrb[0].mxu0  ;;  %v328_v47 = vpop.f32.mrb[0].mxu1 }
 0x10e   :  { %v352_v49 = vrot.slane %v275_v46, 7  ;;  %v277_v51 = vpop.f32.mrb[1].mxu0  ;;  %v1709_v52 = vpop.f32.mrb[1].mxu1  ;;  %v377_v56 = vrot.slane %v328_v47, 1 }
 0x10f   :  { %v279_v54 = vpop.f32.mrb[2].mxu0  ;;  %v332_v55 = vpop.f32.mrb[2].mxu1 }
 0x110   :  { %v363_v57 = vsel %vm351_vm1, 0.0, %v352_v49  ;;  %v353_v58 = vrot.slane %v279_v54, 7  ;;  %v378_v59 = vrot.slane %v332_v55, 1  ;;  %v1712_v60 = vpop.f32.mrb[3].mxu1  ;;  %v281_v61 = vpop.f32.mrb[3].mxu0  ;;  %v1423_v54 = vld [vmem:[%s1865_s6] sm:$0xff]  }
 0x111   :  { %v364_v62 = vsel %vm1705_vm2, %v363_v57, 0.0  ;;  %v1424_v55 = vld [vmem:[%s1865_s6 + $0x40] sm:$0xff]   ;;  %1296 = vmatprep.subr.bf16.mxu0 %v1423_v54  ;;  %v1427_v57 = vld [vmem:[%s1865_s6 + $0x10] sm:$0xff]  }
 0x112   :  { %v368_v2 = vadd.f32 %v364_v62, %v277_v51  ;;  %v379_v3 = vsel %vm376_vm3, %v377_v56, %v378_v59  ;;  %v354_v4 = vsel %vm351_vm1, %v352_v49, %v353_v58  ;;  %1316 = vmatprep.subr.bf16.mxu1 %v1424_v55  ;;  %v1425_v56 = vld [vmem:[%s1865_s6 + $0x8] sm:$0xff]   ;;  %v1431_v62 = vld [vmem:[%s1865_s6 + $0x20] sm:$0xff]  }
 0x113   :  { %v369_v6 = vadd.f32 %v354_v4, %v281_v61  ;;  %v1430_v61 = vld [vmem:[%s1865_s6 + $0x58] sm:$0xff]   ;;  %v1436_v4 = vld [vmem:[%s1865_s6 + $0x70] sm:$0xff]  }
 0x114   :  { %v393_v7 = vadd.f32 %v379_v3, %v368_v2  ;;  %v1434_v2 = vld [vmem:[%s1865_s6 + $0x68] sm:$0xff]   ;;  %v1435_v3 = vld [vmem:[%s1865_s6 + $0x30] sm:$0xff]  }
 0x115   :  { %v285_v9 = vpop.f32.mrb[4].mxu0  ;;  %v338_v10 = vpop.f32.mrb[4].mxu1 }
 0x116   :  { %v355_v12 = vrot.slane %v285_v9, 7  ;;  %v380_v14 = vrot.slane %v338_v10, 1  ;;  %v287_v16 = vpop.f32.mrb[5].mxu0  ;;  %v1729_v17 = vpop.f32.mrb[5].mxu1  ;;  %v403_v20 = vadd.f32 %v1178_v8, %v393_v7 }
 0x117   :  { %v289_v18 = vpop.f32.mrb[6].mxu0  ;;  %v342_v19 = vpop.f32.mrb[6].mxu1 }
 0x118   :  { %v381_v21 = vsel %vm376_vm3, %v378_v59, %v380_v14  ;;  %v356_v22 = vsel %vm351_vm1, %v353_v58, %v355_v12  ;;  %v357_v23 = vrot.slane %v289_v18, 7  ;;  %v1733_v24 = vpop.f32.mrb[7].mxu1  ;;  %v291_v25 = vpop.f32.mrb[7].mxu0  ;;  %v382_v28 = vrot.slane %v342_v19, 1  ;;  %v1428_v58 = vld [vmem:[%s1865_s6 + $0x50] sm:$0xff]   ;;  %v1429_v59 = vld [vmem:[%s1865_s6 + $0x18] sm:$0xff]  }
 0x119   :  { %v390_v26 = vsel %vm1721_vm4, %v381_v21, 0.0  ;;  %v366_v27 = vsel %vm1725_vm5, %v356_v22, 0.0  ;;  %v407_v36 = vmul.f32 0.01, %v403_v20 }
 0x11a   :  { %v394_v30 = vadd.f32 %v390_v26, %v369_v6  ;;  %v370_v31 = vadd.f32 %v366_v27, %v287_v16  ;;  %v358_v32 = vsel %vm351_vm1, %v355_v12, %v357_v23  ;;  %v383_v33 = vsel %vm376_vm3, %v380_v14, %v382_v28  ;;  %v1438_v6 = vld [vmem:[%s1865_s6 + $0x78] sm:$0xff]  }
 0x11b   :  { %v388_v34 = vsel %vm376_vm3, %v382_v28, 0.0  ;;  %v371_v35 = vadd.f32 %v358_v32, %v291_v25  ;;  %v411_v44 = vmax.f32 %v403_v20, %v407_v36 }
 0x11c   :  { %v404_v37 = vadd.f32 %v1178_v8, %v394_v30  ;;  %v395_v38 = vadd.f32 %v383_v33, %v370_v31  ;;  %v392_v39 = vsel %vm1739_vm6, %v388_v34, 0.0  ;;  %v1203_v33 = vld [vmem:[%s1863_s4] ss:$0 sm:$0xff] }
 0x11d   :  { %v396_v40 = vadd.f32 %v392_v39, %v371_v35 }
 0x11e   :  { %v408_v41 = vmul.f32 0.01, %v404_v37  ;;  %v405_v42 = vadd.f32 %v1178_v8, %v395_v38 }
 0x11f   :  { %v406_v43 = vadd.f32 %v1178_v8, %v396_v40 }
 0x120   :  { %v412_v45 = vmax.f32 %v404_v37, %v408_v41  ;;  %v409_v46 = vmul.f32 0.01, %v405_v42 }
 0x121   :  { %v410_v47 = vmul.f32 0.01, %v406_v43 }
 0x122   :  { %v413_v48 = vmax.f32 %v405_v42, %v409_v46  ;;  %v415_v49 = vpack.c.bf16 %v412_v45, %v411_v44 }
 0x123   :  { %v414_v51 = vmax.f32 %v406_v43, %v410_v47  ;;  %v1204_v47 = vld [vmem:[%s1864_s5] ss:$0 sm:$0xff] }
 0x124   :  { %611 = vmatmul.mubr.bf16.vlgmr.msra.gmra.mrb[8].mxu0 %v415_v49  ;;  %1292 = vmatprep.mubr.bf16.mxu1 %v415_v49  ;;  %v756_v29 = vadd.f32 %v1204_v47, %v1733_v24 }
 0x125   :  { %v416_v53 = vpack.c.bf16 %v414_v51, %v413_v48  ;;  %620 = vmatprep.mubr.bf16.mxu0 %v1541_v0  ;;  %1297 = vmatpush3.bf16.msra.mxu0 %v1423_v54  ;;  %v1426_v0 = vld [vmem:[%s1865_s6 + $0x48] sm:$0xff]  }
 0x126   :  { %1298 = vmatprep.subr.bf16.mxu0 %v1425_v56 }
 0x127   :  { %1293 = vmatmul.mubr.bf16.vlgmr.msra.gmra.mrb[8].mxu1 %v416_v53 }
 0x128   :  { %1317 = vmatpush3.bf16.msra.mxu1 %v1424_v55 }
 0x129   :  { %1318 = vmatprep.subr.bf16.mxu1 %v1426_v0  ;;  %1299 = vmatpush3.bf16.msra.mxu0 %v1425_v56 }
 0x12a   :  { %1300 = vmatprep.subr.bf16.mxu0 %v1427_v57 }
 0x12c   :  { %621 = vmatmul.mubr.bf16.gmra.mrb[12].mxu0 %v416_v53  ;;  %1319 = vmatpush3.bf16.msra.mxu1 %v1426_v0  ;;  %v753_v0 = vadd.f32 %v1204_v47, %v1709_v52 }
 0x12d   :  { %1320 = vmatprep.subr.bf16.mxu1 %v1428_v58  ;;  %1301 = vmatpush3.bf16.msra.mxu0 %v1427_v57 }
 0x12e   :  { %1302 = vmatprep.subr.bf16.mxu0 %v1429_v59 }
 0x130   :  { %1321 = vmatpush3.bf16.msra.mxu1 %v1428_v58  ;;  %v754_v58 = vadd.f32 %v1204_v47, %v1712_v60 }
 0x131   :  { %1322 = vmatprep.subr.bf16.mxu1 %v1430_v61  ;;  %1303 = vmatpush3.bf16.msra.mxu0 %v1429_v59 }
 0x132   :  { %1304 = vmatprep.subr.bf16.mxu0 %v1431_v62 }
 0x134   :  { %1323 = vmatpush3.bf16.msra.mxu1 %v1430_v61 }
 0x135   :  { %1324 = vmatprep.subr.bf16.mxu1 %v1432_v63  ;;  %1305 = vmatpush3.bf16.msra.mxu0 %v1431_v62 }
 0x136   :  { %1306 = vmatprep.subr.bf16.mxu0 %v1433_v1 }
 0x138   :  { %1325 = vmatpush3.bf16.msra.mxu1 %v1432_v63 }
 0x139   :  { %1326 = vmatprep.subr.bf16.mxu1 %v1434_v2  ;;  %1307 = vmatpush3.bf16.msra.mxu0 %v1433_v1 }
 0x13a   :  { %1308 = vmatprep.subr.bf16.mxu0 %v1435_v3 }
 0x13c   :  { %1327 = vmatpush3.bf16.msra.mxu1 %v1434_v2 }
 0x13d   :  { %1328 = vmatprep.subr.bf16.mxu1 %v1436_v4  ;;  %1309 = vmatpush3.bf16.msra.mxu0 %v1435_v3 }
 0x13e   :  { %1310 = vmatprep.subr.bf16.mxu0 %v1437_v5 }
 0x140   :  { %1329 = vmatpush3.bf16.msra.mxu1 %v1436_v4 }
 0x141   :  { %1330 = vmatprep.subr.bf16.mxu1 %v1438_v6  ;;  %1311 = vmatpush3.bf16.msra.mxu0 %v1437_v5  ;;  %v755_v5 = vadd.f32 %v1204_v47, %v1729_v17  ;;  %v1028_v47 = vld [vmem:[%s1866_s7] sm:$0xf] }
 0x144   :  { %1331 = vmatpush3.bf16.msra.mxu1 %v1438_v6 }
 0x1f7   :  { %v612_v7 = vpop.f32.mrb[8].mxu0 }
 0x1f8   :  { %v684_v8 = vrot.slane %v612_v7, 7  ;;  %v614_v9 = vpop.f32.mrb[9].mxu0 }
 0x1f9   :  { %v616_v10 = vpop.f32.mrb[10].mxu0 }
 0x1fa   :  { %v695_v11 = vsel %vm351_vm1, 0.0, %v684_v8  ;;  %v685_v12 = vrot.slane %v616_v10, 7  ;;  %v618_v14 = vpop.f32.mrb[11].mxu0  ;;  %v1294_v16 = vpop.f32.mrb[8].mxu1 }
 0x1fb   :  { %v696_v18 = vsel %vm1705_vm2, %v695_v11, 0.0  ;;  %v665_v19 = vpop.f32.mrb[9].mxu1  ;;  %v711_v25 = vrot.slane %v1294_v16, 1 }
 0x1fc   :  { %v700_v20 = vadd.f32 %v696_v18, %v614_v9  ;;  %v686_v21 = vsel %vm351_vm1, %v684_v8, %v685_v12  ;;  %v1295_v22 = vpop.f32.mrb[10].mxu1  ;;  %v708_v28 = vrot.slane %v665_v19, 1 }
 0x1fd   :  { %v701_v23 = vadd.f32 %v686_v21, %v618_v14  ;;  %v713_v26 = vrot.slane %v1295_v22, 1  ;;  %v668_v27 = vpop.f32.mrb[11].mxu1 }
 0x1fe   :  { %v709_v30 = vrot.slane %v668_v27, 1 }
 0x1ff   :  { %v622_v31 = vpop.f32.mrb[12].mxu0  ;;  %v714_v32 = vsel %vm376_vm3, %v711_v25, %v713_v26  ;;  %v719_v44 = vsel %vm376_vm3, %v713_v26, 0.0 }
 0x200   :  { %v710_v50 = vsel %vm376_vm3, %v708_v28, %v709_v30  ;;  %v712_v34 = vsel %vm376_vm3, %v709_v30, %v711_v25  ;;  %v687_v35 = vrot.slane %v622_v31, 7  ;;  %v624_v36 = vpop.f32.mrb[13].mxu0  ;;  %v723_v56 = vsel %vm1739_vm6, %v719_v44, 0.0 }
 0x201   :  { %v721_v37 = vsel %vm1721_vm4, %v712_v34, 0.0  ;;  %v724_v38 = vadd.f32 %v710_v50, %v700_v20  ;;  %v626_v39 = vpop.f32.mrb[14].mxu0 }
 0x202   :  { %v725_v40 = vadd.f32 %v721_v37, %v701_v23  ;;  %v688_v41 = vsel %vm351_vm1, %v685_v12, %v687_v35  ;;  %v689_v42 = vrot.slane %v626_v39, 7  ;;  %v628_v43 = vpop.f32.mrb[15].mxu0 }
 0x203   :  { %v734_v45 = vadd.f32 %v1203_v33, %v724_v38  ;;  %v698_v46 = vsel %vm1725_vm5, %v688_v41, 0.0 }
 0x204   :  { %v735_v48 = vadd.f32 %v1203_v33, %v725_v40  ;;  %v702_v13 = vadd.f32 %v698_v46, %v624_v36  ;;  %v690_v49 = vsel %vm351_vm1, %v687_v35, %v689_v42  ;;  %v1238_v46 = vld [vmem:[%s1866_s7 + $0x4] sm:$0xf] }
 0x205   :  { %v738_v51 = vmul.f32 0.01, %v734_v45  ;;  %v703_v53 = vadd.f32 %v690_v49, %v628_v43 }
 0x206   :  { %v739_v54 = vmul.f32 0.01, %v735_v48  ;;  %v726_v55 = vadd.f32 %v714_v32, %v702_v13  ;;  %v1542_v32 = vmov 0.0  }
 0x207   :  { %v742_v57 = vmax.f32 %v734_v45, %v738_v51  ;;  %v727_v15 = vadd.f32 %v723_v56, %v703_v53  ;;  %1336 = vmatprep.subr.bf16.mxu0 %v1542_v32  ;;  %1344 = vmatprep.subr.bf16.mxu1 %v1542_v32 }
 0x208   :  { %v743_v59 = vmax.f32 %v735_v48, %v739_v54  ;;  %v736_v61 = vadd.f32 %v1203_v33, %v726_v55 }
 0x209   :  { %v757_v62 = vadd.f32 %v753_v0, %v742_v57  ;;  %v737_v63 = vadd.f32 %v1203_v33, %v727_v15 }
 0x20a   :  { %v740_v1 = vmul.f32 0.01, %v736_v61  ;;  %v758_v2 = vadd.f32 %v754_v58, %v743_v59 }
 0x20b   :  { %v741_v3 = vmul.f32 0.01, %v737_v63  ;;  %v761_v4 = vmul.f32 0.01, %v757_v62 }
 0x20c   :  { %v744_v6 = vmax.f32 %v736_v61, %v740_v1  ;;  %v762_v7 = vmul.f32 0.01, %v758_v2 }
 0x20d   :  { %v745_v8 = vmax.f32 %v737_v63, %v741_v3  ;;  %v765_v52 = vmax.f32 %v757_v62, %v761_v4 }
 0x20e   :  { %v759_v9 = vadd.f32 %v755_v5, %v744_v6  ;;  %v766_v10 = vmax.f32 %v758_v2, %v762_v7 }
 0x20f   :  { %v760_v11 = vadd.f32 %v756_v29, %v745_v8  ;;  %769 = vst [vmem:[#allocation7] sm:$0xff] %v765_v52  ;;  %v777_v60 = vrot.slane %v765_v52, 1 }
 0x210   :  { %v763_v12 = vmul.f32 0.01, %v759_v9  ;;  %770 = vst [vmem:[#allocation7 + $0x8] sm:$0xff] %v766_v10  ;;  %v778_v14 = vrot.slane %v766_v10, 1 }
 0x211   :  { %v764_v16 = vmul.f32 0.01, %v760_v11 }
 0x212   :  { %v767_v18 = vmax.f32 %v759_v9, %v763_v12  ;;  %v779_v19 = vsel %vm376_vm3, %v777_v60, %v778_v14 }
 0x213   :  { %v768_v20 = vmax.f32 %v760_v11, %v764_v16  ;;  %v789_v17 = vmax.f32 %v765_v52, %v779_v19 }
 0x214   :  { %771 = vst [vmem:[#allocation7 + $0x10] sm:$0xff] %v767_v18  ;;  %v780_v21 = vrot.slane %v767_v18, 1 }
 0x215   :  { %772 = vst [vmem:[#allocation7 + $0x18] sm:$0xff] %v768_v20  ;;  %v782_v24 = vrot.slane %v768_v20, 1 }
 0x216   :  { %v781_v22 = vsel %vm376_vm3, %v778_v14, %v780_v21 }
 0x217   :  { %v790_v23 = vmax.f32 %v766_v10, %v781_v22  ;;  %v783_v25 = vsel %vm376_vm3, %v780_v21, %v782_v24  ;;  %v788_v26 = vsel %vm376_vm3, %v782_v24, 0.0 }
 0x218   :  { %v791_v27 = vmax.f32 %v767_v18, %v783_v25  ;;  %v792_v28 = vmax.f32 %v768_v20, %v788_v26 }
 0x219   :  { %v793_v30 = vpack.c.bf16 %v790_v23, %v789_v17 }
 0x21a   :  { %v794_v31 = vpack.c.bf16 %v792_v28, %v791_v27 }
 0x21b   :  { %1312 = vmatprep.mubr.bf16.mxu0 %v793_v30  ;;  %1332 = vmatprep.mubr.bf16.mxu1 %v793_v30 }
 0x21c   :  { %1313 = vmatmul.mubr.bf16.vlgmr.msra.gmra.mrb[16].mxu0 %v794_v31  ;;  %1333 = vmatmul.mubr.bf16.vlgmr.msra.gmra.mrb[12].mxu1 %v794_v31 }
 0x21d   :  { %1348 = vmatprep.mubr.msk.bf16.mxu1 %vm1543_vm7, %v1542_v32  ;;  %1340 = vmatprep.mubr.msk.bf16.mxu0 %vm1543_vm7, %v1542_v32 }
 0x2ef   :  { %v1314_v33 = vpop.f32.mrb[16].mxu0  ;;  %v1334_v50 = vpop.f32.mrb[12].mxu1 }
 0x2f0   :  { %v1024_v34 = vmax.f32 %v1314_v33, %v1334_v50  ;;  %v893_v35 = vpop.f32.mrb[17].mxu0  ;;  %v1007_v36 = vpop.f32.mrb[13].mxu1 }
 0x2f1   :  { %v1022_v37 = vmax.f32 %v893_v35, %v1007_v36  ;;  %v1315_v38 = vpop.f32.mrb[18].mxu0  ;;  %v1335_v39 = vpop.f32.mrb[14].mxu1 }
 0x2f2   :  { %v1025_v40 = vmax.f32 %v1315_v38, %v1335_v39  ;;  %v896_v41 = vpop.f32.mrb[19].mxu0  ;;  %v1010_v42 = vpop.f32.mrb[15].mxu1 }
 0x2f3   :  { %v1023_v43 = vmax.f32 %v896_v41, %v1010_v42 }
 0x2f4   :  { %v1027_v44 = vpack.c.bf16 %v1025_v40, %v1024_v34 }
 0x2f5   :  { %v1026_v45 = vpack.c.bf16 %v1023_v43, %v1022_v37 }
 0x2f7   :  { %1337 = vmatpush3.bf16.msra.mxu0 %v1026_v45  ;;  %1345 = vmatpush3.bf16.msra.mxu1 %v1026_v45 }
 0x2f8   :  { %1338 = vmatprep.subr.bf16.mxu0 %v1542_v32  ;;  %1346 = vmatprep.subr.bf16.mxu1 %v1542_v32 }
 0x2fb   :  { %1339 = vmatpush3.bf16.msra.mxu0 %v1027_v44  ;;  %1347 = vmatpush3.bf16.msra.mxu1 %v1027_v44 }
 0x2fe   :  { %1349 = vmatmul.mubr.msk.bf16.vlgmr.msra.gmra.mrb[16].mxu1 %vm1029_vm8, %v1238_v46  ;;  %1341 = vmatmul.mubr.msk.bf16.vlgmr.msra.gmra.mrb[20].mxu0 %vm1029_vm8, %v1028_v47 }
 0x2ff   :  { %1494 = shalt.err (!%p1491_p6)
}
 0x300   :  { %s1495_s1 = scalar_lea.hbm %s1867_s8, 512 }
 0x301   :  { %p1496_p7 = scmp.ne.s32.totalorder %s1867_s8, %s1495_s1  ;;  %p1499_p8 = scmp.lt.u32.totalorder %s1495_s1, %s1867_s8 }
 0x303   :  { %p1501_p9 = pnand %p1499_p8, %p1496_p7 }
 0x305   :  { %1504 = shalt.err (!%p1501_p9)
}
 0x306   :  { %s1545_s3 = smov 128   ;;  %s1546_s18 = smov 8  }
 0x307   :  { %1135 = dma.vmem_to_hbm [thread:$0]  %s1130_s0, 512, %s1867_s8, [#allocation4], %s1545_s3, %s1545_s3, %s1546_s18  }
 0x308   :  { %s1547_s21 = smov [#allocation8]  }
 0x309   :  { %s1142_s22 = sshll.u32 %s1547_s21, 4  ;;  %s1143_s22 = int_to_ptr.vmem [resolvable:$true] %s1142_s22 }
 0x30a   :  { %s1505_s23 = scalar_lea.vmem %s1143_s22, 128  ;;  %p1510_p11 = scmp.lt.s32.totalorder %s1143_s22, %s1143_s22 }
 0x30b   :  { %p1506_p10 = scmp.ne.s32.totalorder %s1143_s22, %s1505_s23  ;;  %p1511_p12 = scmp.lt.s32.totalorder %s1505_s23, %s1505_s23 }
 0x30d   :  { %p1512_p13 = por %p1511_p12, %p1510_p11 }
 0x30f   :  { %p1513_p0 = pnand %p1512_p13, %p1506_p10 }
 0x3d1   :  { %v1112_v48 = vpop.f32.mrb[16].mxu1  ;;  %v1067_v13 = vpop.f32.mrb[20].mxu0 }
 0x3d2   :  { %v1350_v49 = vpop.f32.mrb[17].mxu1  ;;  %1119 = vrot.lane.b32.xlu0 %v1112_v48, %s1536_s19  ;;  %v1342_v51 = vpop.f32.mrb[21].mxu0 }
 0x3d3   :  { %v1115_v53 = vpop.f32.mrb[18].mxu1  ;;  %v1070_v54 = vpop.f32.mrb[22].mxu0 }
 0x3d4   :  { %v1351_v55 = vpop.f32.mrb[19].mxu1  ;;  %v1343_v56 = vpop.f32.mrb[23].mxu0 }
 0x444   :  { %v1120_v0 = vpop.permute.xlu0 %1119 }
 0x445   :  { %v1122_v57 = vsel %vm234_vm0, %v1067_v13, %v1120_v0 }
 0x446   :  { %1123 = vst [vmem:[#allocation8] sm:$0xff] %v1122_v57 }
 0x447   :  { %1516 = shalt.err (!%p1513_p0)
}
 0x448   :  { %s1517_s24 = scalar_lea.hbm %s1868_s9, 128 }
 0x449   :  { %p1518_p1 = scmp.ne.s32.totalorder %s1868_s9, %s1517_s24  ;;  %p1521_p2 = scmp.lt.u32.totalorder %s1517_s24, %s1868_s9 }
 0x44b   :  { %p1523_p3 = pnand %p1521_p2, %p1518_p1 }
 0x44d   :  { %1526 = shalt.err (!%p1523_p3)
}
 0x44e   :  { %1145 = dma.vmem_to_hbm [thread:$0]  %s1143_s22, 128, %s1868_s9, [#allocation9]  }
 0x44f   :  { %1531 = dma.done.wait [#allocation4], 512  }
 0x450   :  { %1532 = vsyncadd [#allocation4], 4294966784 }
 0x451   :  { %1533 = dma.done.wait [#allocation9], 128  }
 0x452   :  { %1534 = vsyncadd [#allocation9], 4294967168 }
 0x453   :  { %1152 = vsyncpa [#allocation3], 1 }
 0x454   :  { %1153 = vsyncpa [#allocation6], 1 }
 0x455   :  { %1154 = vsyncpa [#allocation4], 1 }
 0x456   :  { %1155 = vsyncpa [#allocation9], 1 }

</bundles_post_ra>
